<compile_context>
chip_gen: v7x
topology: tpu7x:2x2x1
jax: 0.10.0
libtpu: 0.0.40
codegen_flags: <defaults>
</compile_context>

<pallas_src>
import jax
import jax.numpy as jnp
from jax.experimental import pallas as pl
from jax.experimental.pallas import tpu as pltpu


def _convffn3_kernel(x_ref, w1a_ref, b1a_ref, w1b_ref, b1b_ref, w2_ref, b2_ref, o_ref):
    # x_ref:   (C, tp)   f32 pixel tile (channels on sublanes, pixels on lanes)
    # w1a_ref: (2C, C)   bf16, first chunk of conv.weight  -> LeakyReLU(0.1)
    # b1a_ref: (2C, 1)   f32
    # w1b_ref: (2C, C)   bf16, second chunk of conv.weight -> LeakyReLU(0.01)
    # b1b_ref: (2C, 1)   f32
    # w2_ref:  (C, 2C)   bf16, conv_out.weight
    # b2_ref:  (C, 1)    f32
    # o_ref:   (C, tp)
    x_f32 = x_ref[...]
    x_bf16 = x_f32.astype(jnp.bfloat16)

    # Two (2C, tp) matmuls instead of one (4C, tp) matmul + chunk slice.
    h1 = jnp.dot(w1a_ref[...], x_bf16, preferred_element_type=jnp.float32) + b1a_ref[...]
    h2 = jnp.dot(w1b_ref[...], x_bf16, preferred_element_type=jnp.float32) + b1b_ref[...]

    # LeakyReLU branches + gate sum in f32 (VPU work; f32 on all generations).
    r = jnp.where(h1 >= 0, h1, 0.1 * h1) + jnp.where(h2 >= 0, h2, 0.01 * h2)

    y = x_f32 + jnp.dot(w2_ref[...], r.astype(jnp.bfloat16),
                        preferred_element_type=jnp.float32) + b2_ref[...]
    o_ref[...] = y.astype(o_ref.dtype)


def convffn3_pallas(x_nchw, w1, b1, w2, b2, *, tp=512):
    """ConvFFN3 forward.

    x_nchw: (N, C, H, W) float32.
    w1: (4C, C)   -- PyTorch `conv.weight` squeezed (out_ch, in_ch).
    b1: (4C,)
    w2: (C, 2C)   -- PyTorch `conv_out.weight` squeezed.
    b2: (C,)
    """
    N, C, H, W = x_nchw.shape
    assert w1.shape == (4 * C, C) and b1.shape == (4 * C,)
    assert w2.shape == (C, 2 * C) and b2.shape == (C,)
    C2 = 2 * C
    HW = H * W

    # NCHW is already channels-major: free reshape, pixels land on lanes.
    x3 = x_nchw.reshape(N, C, HW)

    # Pixel tile: a multiple of 128, no larger than the 128-padded spatial extent.
    tp = max(128, (int(tp) // 128) * 128)
    P = pl.cdiv(HW, 128) * 128
    tp = min(tp, P)
    P = pl.cdiv(HW, tp) * tp
    if P != HW:
        x3 = jnp.pad(x3, ((0, 0), (0, 0), (0, P - HW)))

    # Resident parameters: cast once in the wrapper (not per grid step).
    w1a = w1[:C2].astype(jnp.bfloat16)
    w1b = w1[C2:].astype(jnp.bfloat16)
    w2b = w2.astype(jnp.bfloat16)
    b1a = b1[:C2].reshape(C2, 1).astype(jnp.float32)
    b1b = b1[C2:].reshape(C2, 1).astype(jnp.float32)
    b2c = b2.reshape(C, 1).astype(jnp.float32)

    grid = (N, P // tp)

    # VMEM budget: double-buffered x/out tiles (f32) + resident bf16 weights +
    # f32 intermediates; capped so it also fits v7x's 64 MiB physical VMEM.
    tile_bytes = C * tp * 4
    weight_bytes = 6 * C * C * 2 + 5 * C * 4
    est = 4 * tile_bytes + 2 * weight_bytes + 6 * tile_bytes
    vmem_limit = int(min(max(2 * est, 16 * 1024 * 1024), 48 * 1024 * 1024))

    M = N * HW
    cost = pl.CostEstimate(
        flops=12 * M * C * C,
        transcendentals=0,
        bytes_accessed=2 * M * C * 4 + 6 * C * C * 2,
    )

    out3 = pl.pallas_call(
        _convffn3_kernel,
        out_shape=jax.ShapeDtypeStruct((N, C, P), x3.dtype),
        grid_spec=pltpu.PrefetchScalarGridSpec(
            num_scalar_prefetch=0,
            grid=grid,
            in_specs=[
                pl.BlockSpec((None, C, tp), lambda b, j: (b, 0, j)),   # x tile
                pl.BlockSpec((C2, C), lambda b, j: (0, 0)),            # w1 chunk 1 (resident)
                pl.BlockSpec((C2, 1), lambda b, j: (0, 0)),            # b1 chunk 1
                pl.BlockSpec((C2, C), lambda b, j: (0, 0)),            # w1 chunk 2 (resident)
                pl.BlockSpec((C2, 1), lambda b, j: (0, 0)),            # b1 chunk 2
                pl.BlockSpec((C, C2), lambda b, j: (0, 0)),            # w2 (resident)
                pl.BlockSpec((C, 1), lambda b, j: (0, 0)),             # b2
            ],
            out_specs=pl.BlockSpec((None, C, tp), lambda b, j: (b, 0, j)),
        ),
        compiler_params=pltpu.CompilerParams(
            dimension_semantics=("parallel", "parallel"),
            vmem_limit_bytes=vmem_limit,
        ),
        cost_estimate=cost,
        input_output_aliases={0: 0},   # output reuses x's (N, C, P) HBM buffer
    )(x3, w1a, b1a, w1b, b1b, w2b, b2c)

    if P != HW:
        out3 = out3[:, :, :HW]
    return out3.reshape(N, C, H, W)


def _reference(x_nchw, w1, b1, w2, b2):
    """Pure-JAX f32 reference mirroring the PyTorch forward (1x1 convs as matmuls)."""
    N, C, H, W = x_nchw.shape
    xf = x_nchw.reshape(N, C, H * W).astype(jnp.float32)          # (N, C, M)
    h = jnp.einsum("oc,ncm->nom", w1, xf) + b1[None, :, None]
    C2 = 2 * C
    x1, x2 = h[:, :C2], h[:, C2:]
    r = jnp.where(x1 >= 0, x1, 0.1 * x1) + jnp.where(x2 >= 0, x2, 0.01 * x2)
    y = xf + jnp.einsum("oc,ncm->nom", w2, r) + b2[None, :, None]
    return y.reshape(N, C, H, W)


if __name__ == "__main__":
    key = jax.random.PRNGKey(0)
    k_x, k_w1, k_b1, k_w2, k_b2 = jax.random.split(key, 5)

    N, C, H, W = 2, 4, 16, 16            # in_ch = 4, internal_ch = 8
    C2, C4 = 2 * C, 4 * C

    x = jax.random.normal(k_x, (N, C, H, W), dtype=jnp.float32)

    # PyTorch conv weights are (out, in, 1, 1); stored squeezed as (out, in).
    w1 = jax.random.normal(k_w1, (C4, C), dtype=jnp.float32) * 0.2
    b1 = jax.random.normal(k_b1, (C4,), dtype=jnp.float32) * 0.1
    w2 = jax.random.normal(k_w2, (C, C2), dtype=jnp.float32) * 0.2
    b2 = jax.random.normal(k_b2, (C,), dtype=jnp.float32) * 0.1

    y = convffn3_pallas(x, w1, b1, w2, b2)
    y = jax.block_until_ready(y)

    y_ref = _reference(x, w1, b1, w2, b2)
    assert y.shape == x.shape
    # bf16 MXU operands -> looser tolerance than a pure-f32 path.
    max_err = float(jnp.max(jnp.abs(y - y_ref)))
    assert jnp.allclose(y, y_ref, atol=2e-2, rtol=2e-2), f"mismatch vs reference (max abs err {max_err})"

    print("KERNEL_OK")
</pallas_src>

<mosaic_0001>
module attributes {stable_mosaic.version = 11 : i64} {
  func.func @_convffn3_kernel(%arg0: i32, %arg1: i32, %arg2: memref<1x4x256xf32, #tpu.memory_space<vmem>>, %arg3: memref<8x4xbf16, #tpu.memory_space<vmem>>, %arg4: memref<8x1xf32, #tpu.memory_space<vmem>>, %arg5: memref<8x4xbf16, #tpu.memory_space<vmem>>, %arg6: memref<8x1xf32, #tpu.memory_space<vmem>>, %arg7: memref<4x8xbf16, #tpu.memory_space<vmem>>, %arg8: memref<4x1xf32, #tpu.memory_space<vmem>>, %arg9: memref<1x4x256xf32, #tpu.memory_space<vmem>>) attributes {dimension_semantics = [#tpu.dimension_semantics<parallel>, #tpu.dimension_semantics<parallel>], iteration_bounds = array<i64: 2, 1>, scalar_prefetch = 0 : i64, scratch_operands = 0 : i64, tpu.core_type = #tpu.core_type<tc>, window_params = [{transform_indices = @transform_0, window_bounds = array<i64: 1, 4, 256>}, {pipeline_mode = #tpu.pipeline_mode<synchronous>, transform_indices = @transform_1, window_bounds = array<i64: 8, 4>}, {pipeline_mode = #tpu.pipeline_mode<synchronous>, transform_indices = @transform_2, window_bounds = array<i64: 8, 1>}, {pipeline_mode = #tpu.pipeline_mode<synchronous>, transform_indices = @transform_3, window_bounds = array<i64: 8, 4>}, {pipeline_mode = #tpu.pipeline_mode<synchronous>, transform_indices = @transform_4, window_bounds = array<i64: 8, 1>}, {pipeline_mode = #tpu.pipeline_mode<synchronous>, transform_indices = @transform_5, window_bounds = array<i64: 4, 8>}, {pipeline_mode = #tpu.pipeline_mode<synchronous>, transform_indices = @transform_6, window_bounds = array<i64: 4, 1>}, {transform_indices = @transform_7, window_bounds = array<i64: 1, 4, 256>}]} {
    %c0 = arith.constant 0 : index
    %c0_0 = arith.constant 0 : index
    %c0_1 = arith.constant 0 : index
    %0 = vector.load %arg2[%c0, %c0_0, %c0_1] : memref<1x4x256xf32, #tpu.memory_space<vmem>>, vector<1x4x256xf32>
    %1 = vector.shape_cast %0 : vector<1x4x256xf32> to vector<4x256xf32>
    %2 = arith.truncf %1 : vector<4x256xf32> to vector<4x256xbf16>
    %c0_2 = arith.constant 0 : index
    %c0_3 = arith.constant 0 : index
    %3 = vector.load %arg3[%c0_2, %c0_3] : memref<8x4xbf16, #tpu.memory_space<vmem>>, vector<8x4xbf16>
    %cst = arith.constant dense<0.000000e+00> : vector<8x256xf32>
    %4 = tpu.matmul %3, %2, %cst {dimension_numbers = #tpu.dot_dimension_numbers<[1], [0], [0], [1], [0, 0, 1, 1], [], []>} : vector<8x4xbf16>, vector<4x256xbf16>, vector<8x256xf32> -> vector<8x256xf32>
    %c0_4 = arith.constant 0 : index
    %c0_5 = arith.constant 0 : index
    %5 = vector.load %arg4[%c0_4, %c0_5] : memref<8x1xf32, #tpu.memory_space<vmem>>, vector<8x1xf32>
    %6 = vector.broadcast %5 : vector<8x1xf32> to vector<8x256xf32>
    %7 = arith.addf %4, %6 : vector<8x256xf32>
    %c0_6 = arith.constant 0 : index
    %c0_7 = arith.constant 0 : index
    %8 = vector.load %arg5[%c0_6, %c0_7] : memref<8x4xbf16, #tpu.memory_space<vmem>>, vector<8x4xbf16>
    %cst_8 = arith.constant dense<0.000000e+00> : vector<8x256xf32>
    %9 = tpu.matmul %8, %2, %cst_8 {dimension_numbers = #tpu.dot_dimension_numbers<[1], [0], [0], [1], [0, 0, 1, 1], [], []>} : vector<8x4xbf16>, vector<4x256xbf16>, vector<8x256xf32> -> vector<8x256xf32>
    %c0_9 = arith.constant 0 : index
    %c0_10 = arith.constant 0 : index
    %10 = vector.load %arg6[%c0_9, %c0_10] : memref<8x1xf32, #tpu.memory_space<vmem>>, vector<8x1xf32>
    %11 = vector.broadcast %10 : vector<8x1xf32> to vector<8x256xf32>
    %12 = arith.addf %9, %11 : vector<8x256xf32>
    %cst_11 = arith.constant 0.000000e+00 : f32
    %13 = vector.broadcast %cst_11 : f32 to vector<8x256xf32>
    %14 = arith.cmpf oge, %7, %13 : vector<8x256xf32>
    %cst_12 = arith.constant 1.000000e-01 : f32
    %15 = vector.broadcast %cst_12 : f32 to vector<8x256xf32>
    %16 = arith.mulf %15, %7 : vector<8x256xf32>
    %17 = arith.select %14, %7, %16 : vector<8x256xi1>, vector<8x256xf32>
    %cst_13 = arith.constant 0.000000e+00 : f32
    %18 = vector.broadcast %cst_13 : f32 to vector<8x256xf32>
    %19 = arith.cmpf oge, %12, %18 : vector<8x256xf32>
    %cst_14 = arith.constant 0.00999999977 : f32
    %20 = vector.broadcast %cst_14 : f32 to vector<8x256xf32>
    %21 = arith.mulf %20, %12 : vector<8x256xf32>
    %22 = arith.select %19, %12, %21 : vector<8x256xi1>, vector<8x256xf32>
    %23 = arith.addf %17, %22 : vector<8x256xf32>
    %c0_15 = arith.constant 0 : index
    %c0_16 = arith.constant 0 : index
    %24 = vector.load %arg7[%c0_15, %c0_16] : memref<4x8xbf16, #tpu.memory_space<vmem>>, vector<4x8xbf16>
    %25 = arith.truncf %23 : vector<8x256xf32> to vector<8x256xbf16>
    %cst_17 = arith.constant dense<0.000000e+00> : vector<4x256xf32>
    %26 = tpu.matmul %24, %25, %cst_17 {dimension_numbers = #tpu.dot_dimension_numbers<[1], [0], [0], [1], [0, 0, 1, 1], [], []>} : vector<4x8xbf16>, vector<8x256xbf16>, vector<4x256xf32> -> vector<4x256xf32>
    %27 = arith.addf %1, %26 : vector<4x256xf32>
    %c0_18 = arith.constant 0 : index
    %c0_19 = arith.constant 0 : index
    %28 = vector.load %arg8[%c0_18, %c0_19] : memref<4x1xf32, #tpu.memory_space<vmem>>, vector<4x1xf32>
    %29 = vector.broadcast %28 : vector<4x1xf32> to vector<4x256xf32>
    %30 = arith.addf %27, %29 : vector<4x256xf32>
    %c0_20 = arith.constant 0 : index
    %c0_21 = arith.constant 0 : index
    %c0_22 = arith.constant 0 : index
    %31 = vector.load %arg9[%c0_20, %c0_21, %c0_22] : memref<1x4x256xf32, #tpu.memory_space<vmem>>, vector<1x4x256xf32>
    %32 = vector.shape_cast %31 : vector<1x4x256xf32> to vector<4x256xf32>
    %33 = vector.shape_cast %30 : vector<4x256xf32> to vector<1x4x256xf32>
    tpu.vector_store %arg9[%c0_20, %c0_21, %c0_22], %33 {strides = array<i32>} : memref<1x4x256xf32, #tpu.memory_space<vmem>>, vector<1x4x256xf32>,
    return
  }
  func.func @transform_0(%arg0: i32, %arg1: i32) -> (i32, i32, i32) {
    %c0_i32 = arith.constant 0 : i32
    %c0_i32_0 = arith.constant 0 : i32
    return %arg0, %c0_i32, %arg1 : i32, i32, i32
  }
  func.func @transform_1(%arg0: i32, %arg1: i32) -> (i32, i32) {
    %c0_i32 = arith.constant 0 : i32
    %c0_i32_0 = arith.constant 0 : i32
    %c0_i32_1 = arith.constant 0 : i32
    return %c0_i32, %c0_i32_0 : i32, i32
  }
  func.func @transform_2(%arg0: i32, %arg1: i32) -> (i32, i32) {
    %c0_i32 = arith.constant 0 : i32
    %c0_i32_0 = arith.constant 0 : i32
    %c0_i32_1 = arith.constant 0 : i32
    return %c0_i32, %c0_i32_0 : i32, i32
  }
  func.func @transform_3(%arg0: i32, %arg1: i32) -> (i32, i32) {
    %c0_i32 = arith.constant 0 : i32
    %c0_i32_0 = arith.constant 0 : i32
    %c0_i32_1 = arith.constant 0 : i32
    return %c0_i32, %c0_i32_0 : i32, i32
  }
  func.func @transform_4(%arg0: i32, %arg1: i32) -> (i32, i32) {
    %c0_i32 = arith.constant 0 : i32
    %c0_i32_0 = arith.constant 0 : i32
    %c0_i32_1 = arith.constant 0 : i32
    return %c0_i32, %c0_i32_0 : i32, i32
  }
  func.func @transform_5(%arg0: i32, %arg1: i32) -> (i32, i32) {
    %c0_i32 = arith.constant 0 : i32
    %c0_i32_0 = arith.constant 0 : i32
    %c0_i32_1 = arith.constant 0 : i32
    return %c0_i32, %c0_i32_0 : i32, i32
  }
  func.func @transform_6(%arg0: i32, %arg1: i32) -> (i32, i32) {
    %c0_i32 = arith.constant 0 : i32
    %c0_i32_0 = arith.constant 0 : i32
    %c0_i32_1 = arith.constant 0 : i32
    return %c0_i32, %c0_i32_0 : i32, i32
  }
  func.func @transform_7(%arg0: i32, %arg1: i32) -> (i32, i32, i32) {
    %c0_i32 = arith.constant 0 : i32
    %c0_i32_0 = arith.constant 0 : i32
    return %arg0, %c0_i32, %arg1 : i32, i32, i32
  }
}

</mosaic_0001>

<bundles_post_ra>
// kernel: tpu_custom_call.1
= control target key start
LH: loop header
LB: loop body
LE: loop exit
PB: predicated region body
PF: predicated region fallthrough
CT: control target
= control target key end

     0   :  { %12 = vsyncpa [#allocation3], 0  ;;  %s1071_s0 = inlined_call_operand.hbm [shape: f32[2,4,256], index: 0, kind: input, shape index: {}, may-alias: {0,7}]   ;;  %s1072_s1 = inlined_call_operand.vmem [shape: bf16[8,4], index: 1, kind: input, shape index: {}]   ;;  %s1073_s2 = inlined_call_operand.vmem [shape: f32[8,1], index: 2, kind: input, shape index: {}]   ;;  %s1074_s3 = inlined_call_operand.vmem [shape: bf16[8,4], index: 3, kind: input, shape index: {}]   ;;  %s1075_s4 = inlined_call_operand.vmem [shape: f32[8,1], index: 4, kind: input, shape index: {}]   ;;  %s1076_s5 = inlined_call_operand.vmem [shape: bf16[4,8], index: 5, kind: input, shape index: {}]   ;;  %s1077_s6 = inlined_call_operand.vmem [shape: f32[4,1], index: 6, kind: input, shape index: {}]   ;;  %s1078_s7 = inlined_call_operand.hbm [shape: f32[2,4,256], index: 7, kind: output, shape index: {}, may-alias: {0,7}]  }
   0x1   :  { %14 = vsyncpa [#allocation3 + $0x1], 0 }
   0x2   :  { %15 = vsyncpa [#allocation4], 0 }
   0x3   :  { %17 = vsyncpa [#allocation4 + $0x1], 0  ;;  %s870_s24 = smov 0   ;;  %s872_s25 = smov 0  }
   0x4   :  { %s874_s26 = smov 0   ;;  %s876_s27 = smov 0  }
   0x5   :  { %s878_s28 = smov 0   ;;  %s880_s29 = smov 0  }
   0x6 LB: > { %s622_s30 = sadd.s32 4294967295, %s824_s29   ;;  %s623_s8 = sadd.s32 4294967294, %s824_s29   ;;  %s824_s29 = sphi %s880_s29, %s23_s29   ;;  %s820_s28 = sphi %s878_s28, %s1094_s28   ;;  %s816_s27 = sphi %s876_s27, %s1093_s27   ;;  %s812_s26 = sphi %s874_s26, %s1092_s26   ;;  %s808_s25 = sphi %s872_s25, %s1091_s25   ;;  %s804_s24 = sphi %s870_s24, %s1090_s24  }
   0x7   : > { %s35_s9 = sadd.s32 1, %s820_s28  ;;  %s44_s10 = sadd.s32 1, %s812_s26 }
   0x8   : > { %p37_p0 = scmp.ge.s32.totalorder %s35_s9, 2  ;;  %p51_p1 = scmp.ne.s32.totalorder %s812_s26, %s808_s25 }
   0x9   : > { %p52_p2 = scmp.eq.s32.totalorder %s824_s29, 0  ;;  %p57_p3 = scmp.ne.s32.totalorder %s808_s25, %s804_s24 }
   0xa   : > { %s1096_s9 = smov (%p37_p0, %s35_s9), 0  ;;  %p58_p5 = scmp.eq.s32.totalorder %s622_s30, 0 }
   0xb   : > { %p911_p4 = por %p52_p2, %p51_p1  ;;  %s39_s12 = ssub.s32 %s820_s28, %s1096_s9 }
   0xc   : > { %p209_p6 = scmp.eq.s32.totalorder %s622_s30, 1  ;;  %p42_p7 = scmp.eq.s32.totalorder %s39_s12, 0 }
   0xd   : > { %p917_p8 = por %p58_p5, %p57_p3  ;;  %p215_p10 = scmp.eq.s32.totalorder %s623_s8, 1 }
   0xe   : > { %p921_p9 = por %p209_p6, %p51_p1  ;;  %p657_p13 = scmp.lt.s32.totalorder %s824_s29, 2 }
   0xf   : > { %s926_s15 = scalar_select %p42_p7, %s812_s26, %s44_s10  }
  0x10   : > { %s1082_s14 = scalar_select %p921_p9, 1, 0 }
  0x11   : > { %p928_p11 = por %p215_p10, %p57_p3  ;;  %s253_s17 = sand.u32 1, %s812_s26  }
  0x12   : > { %s626_s18 = sshll.u32 %s253_s17, 3  ;;  %s643_s19 = sshll.u32 %s820_s28, 7 }
  0x13   : > { %s1083_s16 = scalar_select %p928_p11, 1, 0 }
  0x14   : > { %s939_s22 = scalar_lea.hbm %s1071_s0, %s643_s19  ;;  %s257_s23 = scalar_lea.vmem [#allocation2], %s626_s18 }
  0x15   : > { %s267_s30 = sshll.u32 %s257_s23, 4  ;;  %p945_p0 = pnand %p657_p13, %p911_p4  ;;  %s941_s30 = int_to_ptr.vmem [resolvable:$true] %s267_s30 }
  0x16   : > { %s254_s10 = scalar_lea.sflag [#allocation3], %s253_s17  ;;  %s712_s12 = scalar_lea.hbm %s939_s22, 128 }
  0x17   : > { %p713_p3 = scmp.ne.s32.totalorder %s939_s22, %s712_s12  ;;  %p714_p5 = pneg %p945_p0 }
  0x18   : > { %s717_s11 = scalar_lea.hbm %s1071_s0, 256  ;;  %p718_p4 = scmp.lt.u32.totalorder %s939_s22, %s1071_s0 }
  0x19   : > { %p715_p6 = pnand %p714_p5, %p713_p3  ;;  %p719_p10 = scmp.lt.u32.totalorder %s717_s11, %s712_s12 }
  0x1a   : > { %p721_p12 = scmp.lt.u32.totalorder %s712_s12, %s939_s22 }
  0x1b   : > { %p716_p7 = pneg %p715_p6  ;;  %p720_p13 = por %p719_p10, %p718_p4 }
  0x1d   : > { %p722_p1 = por %p721_p12, %p720_p13 }
  0x1f   : > { %p723_p2 = pnand %p722_p1, %p716_p7 }
  0x21   : > { %726 = shalt.err (!%p723_p2)
}
  0x22   : > { %s727_s17 = scalar_lea.vmem %s941_s30, 128  ;;  %s826_s23 = smov [#allocation2]  }
  0x23   : > { %p728_p3 = scmp.ne.s32.totalorder %s941_s30, %s727_s17  ;;  %s732_s18 = sshll.u32 %s826_s23, 4  ;;  %s733_s18 = int_to_ptr.vmem [resolvable:$false] %s732_s18 }
  0x24   : > { %s734_s19 = scalar_lea.vmem %s733_s18, 256  ;;  %p735_p9 = scmp.lt.s32.totalorder %s941_s30, %s733_s18 }
  0x25   : > { %p730_p6 = pnand %p728_p3, %p714_p5  ;;  %p736_p4 = scmp.lt.s32.totalorder %s734_s19, %s727_s17 }
  0x27   : > { %p731_p11 = pneg %p730_p6  ;;  %p737_p10 = por %p736_p4, %p735_p9 }
  0x29   : > { %p738_p12 = pnand %p737_p10, %p731_p11 }
  0x2b   : > { %741 = shalt.err (!%p738_p12)
}
  0x2c   : > { %652 = dma.hbm_to_vmem [thread:$0]  (!%p945_p0), %s939_s22, 128, %s941_s30, %s254_s10  }
  0x2d   : > { %p1085_p1 = scmp.lt.s32.totalorder %s824_s29, 3  ;;  %p1086_p2 = scmp.ge.s32.totalorder %s824_s29, 1 }
  0x2f   : > { %p273_p5 = pnand %p1086_p2, %p1085_p1 }
  0x30   : > { %s981_s12 = sand.u32 (!%p273_p5), 1, %s808_s25  }
  0x31   : > { %276 = sbr.rel (%p273_p5) target bundleno = 525 (0x20d), region = 48  ;;  %s630_s11 = sshll.u32 (!%p273_p5), %s981_s12, 3 }
  0x32   : > { %s279_s20 = scalar_lea.sflag (!%p273_p5), [#allocation3], %s981_s12  ;;  %s282_s8 = scalar_lea.vmem (!%p273_p5), [#allocation2], %s630_s11 }
  0x38   : > { %795 = dma.done.wait (%p917_p8), %s279_s20, 128  }
  0x39   : > { %797 = vsyncadd (%p917_p8), %s279_s20, 4294967168  ;;  %v827_v0 = vmov 0   ;;  %v991_v1 = vld [vmem:[%s282_s8] sm:$0xff]  ;;  %vm333_vm0 = vcmask 1041408   ;;  %vm329_vm1 = vcmask 31744   ;;  %vm453_vm6 = vcmask 1043456  }
  0x3a   : > { %372 = vmatprep.mubr.bf16.mxu0 %v827_v0  ;;  %423 = vmatprep.mubr.bf16.mxu1 %v827_v0  ;;  %v318_v2 = vcombine.high %v991_v1, %v991_v1  ;;  %v320_v3 = vpack.c.bf16 %v991_v1, %v991_v1  ;;  %v323_v4 = vld [vmem:[%s1073_s2] sm:$0xff]  ;;  %vm449_vm7 = vcmask 64512   ;;  %v828_v39 = vmov 839922192   ;;  %s644_s30 = sshll.u32 %s816_s27, 7  ;;  %s312_s13 = scalar_lea.vmem [#allocation5], %s630_s11 }
  0x3b   : > { %709 = vset.pattern.permute.xlu0 %v827_v0  ;;  %710 = vset.pattern.permute.xlu1 %v827_v0  ;;  %v382_v7 = vld [vmem:[%s1075_s4] sm:$0xff]  ;;  %v512_v40 = vunpack.c.l.s4 %v828_v39  ;;  %v514_v41 = vlaneseq  ;;  %s538_s10 = sshll.u32 %s312_s13, 4  ;;  %s1022_s23 = scalar_lea.hbm %s1078_s7, %s644_s30  ;;  %s1024_s10 = int_to_ptr.vmem [resolvable:$true] %s538_s10 }
  0x3c   : > { %326 = vperm.xlu0 %709, %v323_v4   ;;  %v321_v5 = vpack.c.bf16 %v318_v2, %v318_v2  ;;  %v335_v6 = vsel %vm333_vm0, %v320_v3, 0  ;;  %v322_v8 = vld [vmem:[%s1072_s1] sm:$0xf]  ;;  %s522_s18 = scalar_lea.sflag [#allocation4], %s981_s12  ;;  %s742_s19 = scalar_lea.vmem %s1024_s10, 128 }
  0x3d   : > { %v381_v9 = vld [vmem:[%s1074_s3] sm:$0xf]  ;;  %v513_v42 = vunpack.c.0.s8 %v512_v40  ;;  %v515_v43 = vshrl.u32 %v514_v41, 7  ;;  %p743_p8 = scmp.ne.s32.totalorder %s1024_s10, %s742_s19  ;;  %p1087_p9 = scmp.ne.s32.totalorder %s1082_s14, 0 }
  0x3e   : > { %632 = vmatprep.subr.msk.bf16.mxu0 %vm333_vm0, %v321_v5  ;;  %634 = vmatprep.subr.msk.bf16.mxu1 %vm333_vm0, %v321_v5  ;;  %v506_v10 = vld [vmem:[%s1077_s6] sm:$0xf]  ;;  %s829_s27 = smov [#allocation5]  }
  0x3f   : > { %341 = vmatpush1.bf16.msra.mxu0 %v335_v6  ;;  %392 = vmatpush1.bf16.msra.mxu1 %v335_v6  ;;  %v446_v38 = vld [vmem:[%s1076_s5] sm:$0x3]  ;;  %v516_v44 = vsub.s32 %v513_v42, %v515_v43  ;;  %p744_p11 = pnand %p743_p8, %p1087_p9  ;;  %s746_s11 = sshll.u32 %s829_s27, 4  ;;  %s747_s11 = int_to_ptr.vmem [resolvable:$false] %s746_s11 }
  0x40   : > { %385 = vperm.xlu0 %709, %v382_v7   ;;  %509 = vperm.xlu1 %710, %v506_v10   ;;  %s748_s20 = scalar_lea.vmem %s747_s11, 256  ;;  %p749_p7 = scmp.lt.s32.totalorder %s1024_s10, %s747_s11 }
  0x41   : > { %p745_p0 = pneg %p744_p11  ;;  %p750_p13 = scmp.lt.s32.totalorder %s748_s20, %s742_s19 }
  0x42   : > { %633 = vmatmul.mubr.msk.bf16.vlgmr.msra.gmra.mrb[0].mxu0 %vm329_vm1, %v322_v8  ;;  %635 = vmatmul.mubr.msk.bf16.vlgmr.msra.gmra.mrb[0].mxu1 %vm329_vm1, %v381_v9 }
  0x43   : > { %492 = vmatprep.mubr.bf16.mxu0 %v827_v0  ;;  %p751_p3 = por %p750_p13, %p749_p7 }
  0x45   : > { %p752_p6 = pnand %p751_p3, %p745_p0 }
  0xbb   : > { %v327_v11 = vpop.permute.xlu0 %326 }
  0xbf   : > { %v386_v12 = vpop.permute.xlu0 %385  ;;  %v510_v45 = vpop.permute.xlu1 %509 }
  0xc0   : > { %v517_v50 = vrot.slane %v510_v45, %v516_v44 }
 0x115   : > { %v374_v13 = vpop.f32.mrb[0].mxu0  ;;  %v425_v14 = vpop.f32.mrb[0].mxu1 }
 0x116   : > { %v375_v15 = vadd.f32 %v374_v13, %v327_v11  ;;  %v426_v16 = vadd.f32 %v425_v14, %v386_v12  ;;  %v376_v17 = vpop.f32.mrb[1].mxu0  ;;  %v427_v18 = vpop.f32.mrb[1].mxu1 }
 0x117   : > { %v377_v19 = vadd.f32 %v376_v17, %v327_v11  ;;  %v428_v20 = vadd.f32 %v427_v18, %v386_v12  ;;  %v378_v21 = vpop.f32.mrb[2].mxu0  ;;  %v429_v22 = vpop.f32.mrb[2].mxu1 }
 0x118   : > { %vm432_vm2 = vcmp.ge.f32.partialorder %v375_v15, 0.0  ;;  %v434_v23 = vmul.f32 0.1, %v375_v15  ;;  %vm438_vm3 = vcmp.ge.f32.partialorder %v426_v16, 0.0  ;;  %v440_v24 = vmul.f32 0.01, %v426_v16 }
 0x119   : > { %vm433_vm4 = vcmp.ge.f32.partialorder %v377_v19, 0.0  ;;  %v435_v25 = vmul.f32 0.1, %v377_v19  ;;  %vm439_vm5 = vcmp.ge.f32.partialorder %v428_v20, 0.0  ;;  %v441_v26 = vmul.f32 0.01, %v428_v20 }
 0x11a   : > { %v436_v27 = vsel %vm432_vm2, %v375_v15, %v434_v23  ;;  %v442_v28 = vsel %vm438_vm3, %v426_v16, %v440_v24  ;;  %v379_v29 = vpop.f32.mrb[3].mxu0  ;;  %v430_v30 = vpop.f32.mrb[3].mxu1 }
 0x11b   : > { %v437_v31 = vsel %vm433_vm4, %v377_v19, %v435_v25  ;;  %v443_v32 = vsel %vm439_vm5, %v428_v20, %v441_v26  ;;  %v444_v33 = vadd.f32 %v442_v28, %v436_v27 }
 0x11c   : > { %v445_v34 = vadd.f32 %v443_v32, %v437_v31 }
 0x11d   : > { %v447_v35 = vpack.c.bf16 %v444_v33, %v444_v33 }
 0x11e   : > { %v448_v36 = vpack.c.bf16 %v445_v34, %v445_v34 }
 0x11f   : > { %v455_v37 = vsel %vm453_vm6, %v447_v35, 0 }
 0x120   : > { %636 = vmatprep.subr.msk.bf16.mxu0 %vm453_vm6, %v448_v36 }
 0x121   : > { %461 = vmatpush1.bf16.msra.mxu0 %v455_v37 }
 0x124   : > { %637 = vmatmul.mubr.msk.bf16.vlgmr.msra.gmra.mrb[4].mxu0 %vm449_vm7, %v446_v38 }
 0x1f7   : > { %v494_v46 = vpop.f32.mrb[4].mxu0 }
 0x1f8   : > { %v496_v47 = vpop.f32.mrb[5].mxu0 }
 0x1f9   : > { %v503_v48 = vcombine.low %v494_v46, %v496_v47  ;;  %v498_v49 = vpop.f32.mrb[6].mxu0 }
 0x1fa   : > { %v499_v51 = vpop.f32.mrb[7].mxu0 }
 0x1fb   : > { %v505_v52 = vadd.f32 %v503_v48, %v991_v1 }
 0x1fd   : > { %v519_v53 = vadd.f32 %v517_v50, %v505_v52 }
 0x1ff   : > { %520 = vst [vmem:[%s312_s13] sm:$0xff] %v519_v53 }
 0x200   : > { %755 = shalt.err (!%p752_p6)
}
 0x201   : > { %s756_s12 = scalar_lea.hbm %s1022_s23, 128  ;;  %s760_s30 = scalar_lea.hbm %s1078_s7, 256 }
 0x202   : > { %p757_p4 = scmp.ne.s32.totalorder %s1022_s23, %s756_s12  ;;  %p761_p1 = scmp.lt.u32.totalorder %s1022_s23, %s1078_s7 }
 0x203   : > { %p762_p2 = scmp.lt.u32.totalorder %s760_s30, %s756_s12  ;;  %p764_p8 = scmp.lt.u32.totalorder %s756_s12, %s1022_s23 }
 0x204   : > { %p758_p10 = pnand %p757_p4, %p1087_p9 }
 0x205   : > { %p763_p5 = por %p762_p2, %p761_p1 }
 0x206   : > { %p759_p12 = pneg %p758_p10 }
 0x207   : > { %p765_p11 = por %p764_p8, %p763_p5 }
 0x209   : > { %p766_p0 = pnand %p765_p11, %p759_p12 }
 0x20b   : > { %769 = shalt.err (!%p766_p0)
}
 0x20c   : > { %647 = dma.vmem_to_hbm [thread:$0]  (%p1087_p9), %s1024_s10, 128, %s1022_s23, %s522_s18  }
 0x20d PF: > { %s550_s17 = sand.u32 1, %s804_s24   ;;  %p1088_p7 = scmp.ne.s32.totalorder %s1083_s16, 0 }
 0x20e   : > { %p1089_p13 = scmp.ge.s32.totalorder %s824_s29, 2  ;;  %s551_s19 = scalar_lea.sflag [#allocation4], %s550_s17 }
 0x210   : > { %p654_p3 = pnand %p1089_p13, %p1088_p7 }
 0x212   : > { %799 = dma.done.wait (!%p654_p3), %s551_s19, 128  }
 0x213   : > { %801 = vsyncadd (!%p654_p3), %s551_s19, 4294967168  ;;  %s23_s29 = sadd.s32 1, %s824_s29   ;;  %s1090_s24 = smov %s808_s25 }
 0x214   : > { %p20_p6 = scmp.ge.s32.totalorder %s23_s29, 4   ;;  %s1091_s25 = smov %s812_s26 }
 0x215   : > { %s1092_s26 = smov %s926_s15  ;;  %s1093_s27 = smov %s820_s28 }
 0x216   : > { %s1094_s28 = smov %s1096_s9  ;;  %22 = sbr.rel (!%p20_p6) target bundleno = 6 (0x6), region = 93 }
 0x21d   :  { %556 = vsyncpa [#allocation3], 1 }
 0x21e   :  { %558 = vsyncpa [#allocation3 + $0x1], 1 }
 0x21f   :  { %559 = vsyncpa [#allocation4], 1 }
 0x220   :  { %561 = vsyncpa [#allocation4 + $0x1], 1 }

</bundles_post_ra>
